<compile_context>
chip_gen: v7x
topology: tpu7x:2x2x1
jax: 0.10.0
libtpu: 0.0.40
codegen_flags: <defaults>
</compile_context>

<pallas_src>
import functools

import jax
import jax.numpy as jnp
from jax.experimental import pallas as pl
from jax.experimental.pallas import tpu as pltpu


def _edge_kernel(x_ref, top_ref, bot_ref, *rest,
                 kernel_size, H, W, strip_rows, return_all):
    """One (batch, H-strip) tile per grid step.

    x_ref  : (1, TH, W)    unpadded image strip (0/1 values)
    top_ref: (1, 1, p, W)  image rows just above the strip (zeros at image border)
    bot_ref: (1, 1, p, W)  image rows just below the strip (zeros at image border)
    outputs: diff strip [, dil strip, ero strip]
    scratch: (TH + 2p, W) f32 halo-extended strip
    """
    p = kernel_size // 2
    TH = strip_rows
    xh = rest[-1]            # VMEM scratch
    out_refs = rest[:-1]
    row0 = pl.program_id(1) * TH

    xt = x_ref[0].astype(jnp.float32)                       # (TH, W)
    # Halo-extended strip for the vertical taps.
    xh[p:p + TH, :] = xt
    xh[0:p, :] = top_ref[0, 0].astype(jnp.float32)
    xh[p + TH:p + TH + p, :] = bot_ref[0, 0].astype(jnp.float32)

    col = jax.lax.broadcasted_iota(jnp.int32, (TH, W), 1)
    row = jax.lax.broadcasted_iota(jnp.int32, (TH, W), 0) + row0   # absolute rows
    zero = jnp.zeros_like(xt)

    # Cross-shaped fixed-weight conv with zero padding outside the image.
    conv = xt                                                # center tap
    for d in range(1, p + 1):
        # horizontal taps: lane rolls (XLU) + border masks
        r_plus = pltpu.roll(xt, shift=W - d, axis=1)         # [i, j] -> x[i, j + d]
        conv = conv + jnp.where(col + d <= W - 1, r_plus, zero)
        r_minus = pltpu.roll(xt, shift=d, axis=1)            # [i, j] -> x[i, j - d]
        conv = conv + jnp.where(col - d >= 0, r_minus, zero)
        # vertical taps: read the halo-extended strip + border masks
        v_plus = xh[p + d:p + d + TH, :]                     # [i, j] -> x[i + d, j]
        conv = conv + jnp.where(row + d <= H - 1, v_plus, zero)
        v_minus = xh[p - d:p - d + TH, :]                    # [i, j] -> x[i - d, j]
        conv = conv + jnp.where(row - d >= 0, v_minus, zero)

    # Number of cross taps that fall inside the image at each pixel.
    h_cnt = jnp.minimum(col, p) + jnp.minimum((W - 1) - col, p) + 1
    v_cnt = jnp.minimum(row, p) + jnp.minimum((H - 1) - row, p) + 1
    count = (h_cnt + v_cnt - 1).astype(jnp.float32)

    dil = conv > 0.0                  # (conv2d(x,   cross) > 0)
    ero = conv < count                # (conv2d(1-x, cross) > 0) == (count - conv > 0)
    diff = jnp.logical_and(dil, ero)  # (1 - |ero - dil|) > 0

    out_refs[0][0] = diff.astype(out_refs[0].dtype)
    if return_all:
        out_refs[1][0] = dil.astype(out_refs[1].dtype)
        out_refs[2][0] = ero.astype(out_refs[2].dtype)


def _pick_strip_rows(H, W, p, max_strip_rows=None):
    """Largest multiple-of-8 divisor of H that keeps the working set small."""
    budget_bytes = 12 << 20            # fits even v5e's 16 MiB default scoped VMEM
    bytes_per_px = 4 * 9               # dbl-buffered in/out + scratch + f32 temporaries
    cap = max(8, budget_bytes // (bytes_per_px * max(W, 1)))
    if max_strip_rows is not None:
        cap = min(cap, max_strip_rows)
    candidates = [th for th in range(8, H + 1, 8) if H % th == 0 and th > p]
    fitting = [th for th in candidates if th <= cap]
    if fitting:
        return max(fitting)
    if candidates:
        return min(candidates)
    return H                            # fall back: one full plane per step


def edge_generator(x, kernel_size=3, return_all=False, out_dtype=jnp.float32,
                   max_strip_rows=None):
    """JAX/Pallas equivalent of Edge_generator.forward."""
    x = jnp.asarray(x, jnp.float32)
    if x.ndim == 2:
        x = x.reshape(1, 1, x.shape[0], x.shape[1])
    if x.ndim == 3:
        x = x.reshape(1, x.shape[0], x.shape[1], x.shape[2])
    assert x.ndim == 4 and x.shape[1] == 1, "Image must be single channel"
    assert kernel_size % 2 == 1 and kernel_size >= 3, "Kernel size must be odd (>= 3)"
    B, _, H, W = x.shape
    assert H > kernel_size and W > kernel_size, "Image must be larger than kernel size"
    p = kernel_size // 2

    img = x[:, 0]                                        # (B, H, W), unpadded
    TH = _pick_strip_rows(H, W, p, max_strip_rows)
    S = H // TH

    # Tiny cross-strip halo planes: the p rows just above / below every strip
    # (zeros at the image border).  Only 2*p*S*W elements -> negligible HBM traffic.
    zrow = jnp.zeros((B, 1, p, W), img.dtype)
    if S > 1:
        top_body = jnp.stack(
            [img[:, TH - p + r::TH, :][:, :S - 1, :] for r in range(p)], axis=2)
        bot_body = jnp.stack(
            [img[:, TH + r::TH, :][:, :S - 1, :] for r in range(p)], axis=2)
        top = jnp.concatenate([zrow, top_body], axis=1)  # (B, S, p, W)
        bot = jnp.concatenate([bot_body, zrow], axis=1)  # (B, S, p, W)
    else:
        top = zrow
        bot = zrow

    kernel = functools.partial(_edge_kernel, kernel_size=kernel_size, H=H, W=W,
                               strip_rows=TH, return_all=return_all)

    plane = jax.ShapeDtypeStruct((B, H, W), out_dtype)
    strip_spec = pl.BlockSpec((1, TH, W), lambda b, s: (b, s, 0))
    halo_spec = pl.BlockSpec((1, 1, p, W), lambda b, s: (b, s, 0, 0))

    if return_all:
        out_shape = (plane, plane, plane)
        out_specs = (strip_spec, strip_spec, strip_spec)
    else:
        out_shape = plane
        out_specs = strip_spec

    outs = pl.pallas_call(
        kernel,
        out_shape=out_shape,
        grid=(B, S),
        in_specs=[strip_spec, halo_spec, halo_spec],
        out_specs=out_specs,
        scratch_shapes=[pltpu.VMEM((TH + 2 * p, W), jnp.float32)],
        compiler_params=pltpu.CompilerParams(
            dimension_semantics=("parallel", "parallel")),
    )(img, top, bot)

    if return_all:
        diff, dil, ero = outs
        return diff[:, None], dil[:, None], ero[:, None]
    return outs[:, None]


def _reference(x, kernel_size=3, return_all=False):
    """Pure-JAX reference mirroring the PyTorch math."""
    p = kernel_size // 2
    k = jnp.zeros((kernel_size, kernel_size), jnp.float32)
    k = k.at[p, :].set(1.0).at[:, p].set(1.0)
    k = k[None, None]  # OIHW

    def dilate(a):
        r = jax.lax.conv_general_dilated(
            a, k, window_strides=(1, 1), padding=[(p, p), (p, p)],
            dimension_numbers=("NCHW", "OIHW", "NCHW"))
        return (r > 0).astype(jnp.float32)

    img = dilate(x)
    ero = dilate(1.0 - x)
    diff = ((1.0 - jnp.abs(ero - img)) > 0).astype(jnp.float32)
    if return_all:
        return diff, img, ero
    return diff


if __name__ == "__main__":
    key = jax.random.PRNGKey(0)
    k1, k2 = jax.random.split(key)

    # Small NCHW single-channel 0-1 mask (the module asserts C == 1).
    B, C, H, W = 2, 1, 16, 16
    x = (jax.random.uniform(k1, (B, C, H, W)) > 0.5).astype(jnp.float32)
    diff = jax.block_until_ready(edge_generator(x, kernel_size=3))
    ref = _reference(x, kernel_size=3)
    assert diff.shape == (B, C, H, W)
    assert jnp.array_equal(diff, ref), "diff mismatches reference"

    # Larger case: forces multi-strip tiling (8-row strips), lane-dense W=128,
    # and exercises the return_all path.
    B2, H2, W2 = 1, 32, 128
    x2 = (jax.random.uniform(k2, (B2, 1, H2, W2)) > 0.5).astype(jnp.float32)
    diff2, dil2, ero2 = edge_generator(x2, kernel_size=3, return_all=True,
                                       max_strip_rows=8)
    diff2 = jax.block_until_ready(diff2)
    rdiff2, rdil2, rero2 = _reference(x2, kernel_size=3, return_all=True)
    assert jnp.array_equal(diff2, rdiff2), "strip-tiled diff mismatches reference"
    assert jnp.array_equal(dil2, rdil2), "dilation mismatches reference"
    assert jnp.array_equal(ero2, rero2), "erosion mismatches reference"

    print("KERNEL_OK")
</pallas_src>

<mosaic_0001>
module attributes {stable_mosaic.version = 11 : i64} {
  func.func @_edge_kernel(%arg0: i32, %arg1: i32, %arg2: memref<1x16x16xf32, #tpu.memory_space<vmem>>, %arg3: memref<1x1x1x16xf32, #tpu.memory_space<vmem>>, %arg4: memref<1x1x1x16xf32, #tpu.memory_space<vmem>>, %arg5: memref<1x16x16xf32, #tpu.memory_space<vmem>>, %arg6: memref<18x16xf32, #tpu.memory_space<vmem>>) attributes {dimension_semantics = [#tpu.dimension_semantics<parallel>, #tpu.dimension_semantics<parallel>], iteration_bounds = array<i64: 2, 1>, scalar_prefetch = 0 : i64, scratch_operands = 1 : i64, tpu.core_type = #tpu.core_type<tc>, window_params = [{transform_indices = @transform_0, window_bounds = array<i64: 1, 16, 16>}, {transform_indices = @transform_1, window_bounds = array<i64: 1, 1, 1, 16>}, {transform_indices = @transform_2, window_bounds = array<i64: 1, 1, 1, 16>}, {transform_indices = @transform_3, window_bounds = array<i64: 1, 16, 16>}]} {
    %c16_i32 = arith.constant 16 : i32
    %0 = arith.muli %arg1, %c16_i32 : i32
    %c0 = arith.constant 0 : index
    %c0_0 = arith.constant 0 : index
    %c0_1 = arith.constant 0 : index
    %1 = vector.load %arg2[%c0, %c0_0, %c0_1] : memref<1x16x16xf32, #tpu.memory_space<vmem>>, vector<1x16x16xf32>
    %2 = vector.shape_cast %1 : vector<1x16x16xf32> to vector<16x16xf32>
    %c1 = arith.constant 1 : index
    %c0_2 = arith.constant 0 : index
    %3 = vector.load %arg6[%c1, %c0_2] : memref<18x16xf32, #tpu.memory_space<vmem>>, vector<16x16xf32>
    tpu.vector_store %arg6[%c1, %c0_2], %2 {strides = array<i32>} : memref<18x16xf32, #tpu.memory_space<vmem>>, vector<16x16xf32>,
    %c0_3 = arith.constant 0 : index
    %c0_4 = arith.constant 0 : index
    %c0_5 = arith.constant 0 : index
    %c0_6 = arith.constant 0 : index
    %4 = vector.load %arg3[%c0_3, %c0_4, %c0_5, %c0_6] : memref<1x1x1x16xf32, #tpu.memory_space<vmem>>, vector<1x1x1x16xf32>
    %5 = vector.shape_cast %4 : vector<1x1x1x16xf32> to vector<1x16xf32>
    %c0_7 = arith.constant 0 : index
    %c0_8 = arith.constant 0 : index
    %6 = vector.load %arg6[%c0_7, %c0_8] : memref<18x16xf32, #tpu.memory_space<vmem>>, vector<1x16xf32>
    tpu.vector_store %arg6[%c0_7, %c0_8], %5 {strides = array<i32>} : memref<18x16xf32, #tpu.memory_space<vmem>>, vector<1x16xf32>,
    %c0_9 = arith.constant 0 : index
    %c0_10 = arith.constant 0 : index
    %c0_11 = arith.constant 0 : index
    %c0_12 = arith.constant 0 : index
    %7 = vector.load %arg4[%c0_9, %c0_10, %c0_11, %c0_12] : memref<1x1x1x16xf32, #tpu.memory_space<vmem>>, vector<1x1x1x16xf32>
    %8 = vector.shape_cast %7 : vector<1x1x1x16xf32> to vector<1x16xf32>
    %c17 = arith.constant 17 : index
    %c0_13 = arith.constant 0 : index
    %9 = vector.load %arg6[%c17, %c0_13] : memref<18x16xf32, #tpu.memory_space<vmem>>, vector<1x16xf32>
    tpu.vector_store %arg6[%c17, %c0_13], %8 {strides = array<i32>} : memref<18x16xf32, #tpu.memory_space<vmem>>, vector<1x16xf32>,
    %10 = tpu.iota {dimensions = array<i32: 1>} : vector<16x16xi32>
    %11 = tpu.iota {dimensions = array<i32: 0>} : vector<16x16xi32>
    %12 = vector.broadcast %0 : i32 to vector<16x16xi32>
    %13 = arith.addi %11, %12 : vector<16x16xi32>
    %cst = arith.constant 0.000000e+00 : f32
    %14 = vector.broadcast %cst : f32 to vector<16x16xf32>
    %c15_i32 = arith.constant 15 : i32
    %15 = tpu.dynamic_rotate %2 by %c15_i32 dim 1 : vector<16x16xf32>, i32 -> vector<16x16xf32>
    %c1_i32 = arith.constant 1 : i32
    %16 = vector.broadcast %c1_i32 : i32 to vector<16x16xi32>
    %17 = arith.addi %10, %16 : vector<16x16xi32>
    %c15_i32_14 = arith.constant 15 : i32
    %18 = vector.broadcast %c15_i32_14 : i32 to vector<16x16xi32>
    %19 = arith.cmpi sle, %17, %18 : vector<16x16xi32>
    %20 = arith.select %19, %15, %14 : vector<16x16xi1>, vector<16x16xf32>
    %21 = arith.addf %2, %20 : vector<16x16xf32>
    %c1_i32_15 = arith.constant 1 : i32
    %22 = tpu.dynamic_rotate %2 by %c1_i32_15 dim 1 : vector<16x16xf32>, i32 -> vector<16x16xf32>
    %c1_i32_16 = arith.constant 1 : i32
    %23 = vector.broadcast %c1_i32_16 : i32 to vector<16x16xi32>
    %24 = arith.subi %10, %23 : vector<16x16xi32>
    %c0_i32 = arith.constant 0 : i32
    %25 = vector.broadcast %c0_i32 : i32 to vector<16x16xi32>
    %26 = arith.cmpi sge, %24, %25 : vector<16x16xi32>
    %27 = arith.select %26, %22, %14 : vector<16x16xi1>, vector<16x16xf32>
    %28 = arith.addf %21, %27 : vector<16x16xf32>
    %c2 = arith.constant 2 : index
    %c0_17 = arith.constant 0 : index
    %29 = vector.load %arg6[%c2, %c0_17] : memref<18x16xf32, #tpu.memory_space<vmem>>, vector<16x16xf32>
    %c1_i32_18 = arith.constant 1 : i32
    %30 = vector.broadcast %c1_i32_18 : i32 to vector<16x16xi32>
    %31 = arith.addi %13, %30 : vector<16x16xi32>
    %c15_i32_19 = arith.constant 15 : i32
    %32 = vector.broadcast %c15_i32_19 : i32 to vector<16x16xi32>
    %33 = arith.cmpi sle, %31, %32 : vector<16x16xi32>
    %34 = arith.select %33, %29, %14 : vector<16x16xi1>, vector<16x16xf32>
    %35 = arith.addf %28, %34 : vector<16x16xf32>
    %c0_20 = arith.constant 0 : index
    %c0_21 = arith.constant 0 : index
    %36 = vector.load %arg6[%c0_20, %c0_21] : memref<18x16xf32, #tpu.memory_space<vmem>>, vector<16x16xf32>
    %c1_i32_22 = arith.constant 1 : i32
    %37 = vector.broadcast %c1_i32_22 : i32 to vector<16x16xi32>
    %38 = arith.subi %13, %37 : vector<16x16xi32>
    %c0_i32_23 = arith.constant 0 : i32
    %39 = vector.broadcast %c0_i32_23 : i32 to vector<16x16xi32>
    %40 = arith.cmpi sge, %38, %39 : vector<16x16xi32>
    %41 = arith.select %40, %36, %14 : vector<16x16xi1>, vector<16x16xf32>
    %42 = arith.addf %35, %41 : vector<16x16xf32>
    %c1_i32_24 = arith.constant 1 : i32
    %43 = vector.broadcast %c1_i32_24 : i32 to vector<16x16xi32>
    %44 = arith.minsi %10, %43 : vector<16x16xi32>
    %c15_i32_25 = arith.constant 15 : i32
    %45 = vector.broadcast %c15_i32_25 : i32 to vector<16x16xi32>
    %46 = arith.subi %45, %10 : vector<16x16xi32>
    %c1_i32_26 = arith.constant 1 : i32
    %47 = vector.broadcast %c1_i32_26 : i32 to vector<16x16xi32>
    %48 = arith.minsi %46, %47 : vector<16x16xi32>
    %49 = arith.addi %44, %48 : vector<16x16xi32>
    %c1_i32_27 = arith.constant 1 : i32
    %50 = vector.broadcast %c1_i32_27 : i32 to vector<16x16xi32>
    %51 = arith.addi %49, %50 : vector<16x16xi32>
    %c1_i32_28 = arith.constant 1 : i32
    %52 = vector.broadcast %c1_i32_28 : i32 to vector<16x16xi32>
    %53 = arith.minsi %13, %52 : vector<16x16xi32>
    %c15_i32_29 = arith.constant 15 : i32
    %54 = vector.broadcast %c15_i32_29 : i32 to vector<16x16xi32>
    %55 = arith.subi %54, %13 : vector<16x16xi32>
    %c1_i32_30 = arith.constant 1 : i32
    %56 = vector.broadcast %c1_i32_30 : i32 to vector<16x16xi32>
    %57 = arith.minsi %55, %56 : vector<16x16xi32>
    %58 = arith.addi %53, %57 : vector<16x16xi32>
    %c1_i32_31 = arith.constant 1 : i32
    %59 = vector.broadcast %c1_i32_31 : i32 to vector<16x16xi32>
    %60 = arith.addi %58, %59 : vector<16x16xi32>
    %61 = arith.addi %51, %60 : vector<16x16xi32>
    %c1_i32_32 = arith.constant 1 : i32
    %62 = vector.broadcast %c1_i32_32 : i32 to vector<16x16xi32>
    %63 = arith.subi %61, %62 : vector<16x16xi32>
    %64 = arith.sitofp %63 : vector<16x16xi32> to vector<16x16xf32>
    %cst_33 = arith.constant 0.000000e+00 : f32
    %65 = vector.broadcast %cst_33 : f32 to vector<16x16xf32>
    %66 = arith.cmpf ogt, %42, %65 : vector<16x16xf32>
    %67 = arith.cmpf olt, %42, %64 : vector<16x16xf32>
    %68 = arith.andi %66, %67 : vector<16x16xi1>
    %69 = arith.extui %68 : vector<16x16xi1> to vector<16x16xi32>
    %70 = arith.sitofp %69 : vector<16x16xi32> to vector<16x16xf32>
    %c0_34 = arith.constant 0 : index
    %c0_35 = arith.constant 0 : index
    %c0_36 = arith.constant 0 : index
    %71 = vector.load %arg5[%c0_34, %c0_35, %c0_36] : memref<1x16x16xf32, #tpu.memory_space<vmem>>, vector<1x16x16xf32>
    %72 = vector.shape_cast %71 : vector<1x16x16xf32> to vector<16x16xf32>
    %73 = vector.shape_cast %70 : vector<16x16xf32> to vector<1x16x16xf32>
    tpu.vector_store %arg5[%c0_34, %c0_35, %c0_36], %73 {strides = array<i32>} : memref<1x16x16xf32, #tpu.memory_space<vmem>>, vector<1x16x16xf32>,
    return
  }
  func.func @transform_0(%arg0: i32, %arg1: i32) -> (i32, i32, i32) {
    %c0_i32 = arith.constant 0 : i32
    %c0_i32_0 = arith.constant 0 : i32
    return %arg0, %arg1, %c0_i32 : i32, i32, i32
  }
  func.func @transform_1(%arg0: i32, %arg1: i32) -> (i32, i32, i32, i32) {
    %c0_i32 = arith.constant 0 : i32
    %c0_i32_0 = arith.constant 0 : i32
    %c0_i32_1 = arith.constant 0 : i32
    return %arg0, %arg1, %c0_i32, %c0_i32_0 : i32, i32, i32, i32
  }
  func.func @transform_2(%arg0: i32, %arg1: i32) -> (i32, i32, i32, i32) {
    %c0_i32 = arith.constant 0 : i32
    %c0_i32_0 = arith.constant 0 : i32
    %c0_i32_1 = arith.constant 0 : i32
    return %arg0, %arg1, %c0_i32, %c0_i32_0 : i32, i32, i32, i32
  }
  func.func @transform_3(%arg0: i32, %arg1: i32) -> (i32, i32, i32) {
    %c0_i32 = arith.constant 0 : i32
    %c0_i32_0 = arith.constant 0 : i32
    return %arg0, %arg1, %c0_i32 : i32, i32, i32
  }
}

</mosaic_0001>

<bundles_post_ra>
// kernel: tpu_custom_call.1
= control target key start
LH: loop header
LB: loop body
LE: loop exit
PB: predicated region body
PF: predicated region fallthrough
CT: control target
= control target key end

     0   :  { %8 = vsyncpa [#allocation4], 0  ;;  %s947_s0 = inlined_call_operand.hbm [shape: f32[2,16,16], index: 0, kind: input, shape index: {}]   ;;  %s948_s1 = inlined_call_operand.vmem [shape: f32[2,1,1,16], index: 1, kind: input, shape index: {}]   ;;  %s949_s2 = inlined_call_operand.vmem [shape: f32[2,1,1,16], index: 2, kind: input, shape index: {}]   ;;  %s950_s3 = inlined_call_operand.hbm [shape: f32[2,16,16], index: 3, kind: output, shape index: {}]  }
   0x1   :  { %10 = vsyncpa [#allocation4 + $0x1], 0 }
   0x2   :  { %11 = vsyncpa [#allocation5], 0 }
   0x3   :  { %13 = vsyncpa [#allocation5 + $0x1], 0  ;;  %s741_s12 = smov 0   ;;  %s743_s13 = smov 0  }
   0x4   :  { %s745_s14 = smov 0   ;;  %s747_s15 = smov 0  }
   0x5   :  { %s749_s16 = smov 0   ;;  %s751_s17 = smov 0  }
   0x6 LB: > { %s503_s18 = sadd.s32 4294967295, %s709_s17   ;;  %s504_s19 = sadd.s32 4294967294, %s709_s17   ;;  %s709_s17 = sphi %s751_s17, %s19_s17   ;;  %s705_s16 = sphi %s749_s16, %s965_s16   ;;  %s701_s15 = sphi %s747_s15, %s964_s15   ;;  %s697_s14 = sphi %s745_s14, %s963_s14   ;;  %s693_s13 = sphi %s743_s13, %s962_s13   ;;  %s689_s12 = sphi %s741_s12, %s961_s12  }
   0x7   : > { %s31_s20 = sadd.s32 1, %s705_s16  ;;  %s40_s21 = sadd.s32 1, %s697_s14 }
   0x8   : > { %p33_p0 = scmp.ge.s32.totalorder %s31_s20, 2  ;;  %p47_p1 = scmp.ne.s32.totalorder %s697_s14, %s693_s13 }
   0x9   : > { %p48_p2 = scmp.eq.s32.totalorder %s709_s17, 0  ;;  %p53_p3 = scmp.ne.s32.totalorder %s693_s13, %s689_s12 }
   0xa   : > { %s967_s20 = smov (%p33_p0, %s31_s20), 0  ;;  %p54_p5 = scmp.eq.s32.totalorder %s503_s18, 0 }
   0xb   : > { %p782_p4 = por %p48_p2, %p47_p1  ;;  %s35_s23 = ssub.s32 %s705_s16, %s967_s20 }
   0xc   : > { %p135_p6 = scmp.eq.s32.totalorder %s503_s18, 1  ;;  %p38_p7 = scmp.eq.s32.totalorder %s35_s23, 0 }
   0xd   : > { %p788_p8 = por %p54_p5, %p53_p3  ;;  %p141_p10 = scmp.eq.s32.totalorder %s504_s19, 1 }
   0xe   : > { %p792_p9 = por %p135_p6, %p47_p1  ;;  %p539_p13 = scmp.lt.s32.totalorder %s709_s17, 2 }
   0xf   : > { %s797_s26 = scalar_select %p38_p7, %s697_s14, %s40_s21  }
  0x10   : > { %s954_s25 = scalar_select %p792_p9, 1, 0 }
  0x11   : > { %p799_p11 = por %p141_p10, %p53_p3  ;;  %s161_s28 = sand.u32 1, %s697_s14  }
  0x12   : > { %s507_s29 = sshll.u32 %s161_s28, 4  ;;  %s525_s30 = sshll.u32 %s705_s16, 8 }
  0x13   : > { %s955_s27 = scalar_select %p799_p11, 1, 0 }
  0x14   : > { %s810_s6 = scalar_lea.hbm %s947_s0, %s525_s30  ;;  %s165_s7 = scalar_lea.vmem [#allocation3], %s507_s29 }
  0x15   : > { %s174_s8 = sshll.u32 %s165_s7, 4  ;;  %p816_p0 = pnand %p539_p13, %p782_p4  ;;  %s812_s8 = int_to_ptr.vmem [resolvable:$true] %s174_s8 }
  0x16   : > { %s821_s10 = scalar_lea.sflag [#allocation4], %s161_s28  ;;  %s597_s11 = scalar_lea.hbm %s810_s6, 256 }
  0x17   : > { %p598_p2 = scmp.ne.s32.totalorder %s810_s6, %s597_s11  ;;  %p599_p3 = pneg %p816_p0 }
  0x18   : > { %s602_s21 = scalar_lea.hbm %s947_s0, 512  ;;  %p603_p4 = scmp.lt.u32.totalorder %s810_s6, %s947_s0 }
  0x19   : > { %p600_p5 = pnand %p599_p3, %p598_p2  ;;  %p604_p7 = scmp.lt.u32.totalorder %s602_s21, %s597_s11 }
  0x1a   : > { %p606_p13 = scmp.lt.u32.totalorder %s597_s11, %s810_s6 }
  0x1b   : > { %p601_p6 = pneg %p600_p5  ;;  %p605_p10 = por %p604_p7, %p603_p4 }
  0x1d   : > { %p607_p12 = por %p606_p13, %p605_p10 }
  0x1f   : > { %p608_p1 = pnand %p607_p12, %p601_p6 }
  0x21   : > { %611 = shalt.err (!%p608_p1)
}
  0x22   : > { %s612_s28 = scalar_lea.vmem %s812_s8, 256  ;;  %s711_s29 = smov [#allocation3]  }
  0x23   : > { %p613_p2 = scmp.ne.s32.totalorder %s812_s8, %s612_s28  ;;  %s617_s30 = sshll.u32 %s711_s29, 4  ;;  %s618_s30 = int_to_ptr.vmem [resolvable:$false] %s617_s30 }
  0x24   : > { %s619_s4 = scalar_lea.vmem %s618_s30, 512  ;;  %p620_p9 = scmp.lt.s32.totalorder %s812_s8, %s618_s30 }
  0x25   : > { %p615_p5 = pnand %p613_p2, %p599_p3  ;;  %p621_p4 = scmp.lt.s32.totalorder %s619_s4, %s612_s28 }
  0x27   : > { %p616_p11 = pneg %p615_p5  ;;  %p622_p7 = por %p621_p4, %p620_p9 }
  0x29   : > { %p623_p10 = pnand %p622_p7, %p616_p11 }
  0x2b   : > { %626 = shalt.err (!%p623_p10)
}
  0x2c   : > { %s712_s5 = smov 128   ;;  %s713_s7 = smov 8  }
  0x2d   : > { %534 = dma.hbm_to_vmem [thread:$0]  (!%p816_p0), %s810_s6, 256, %s812_s8, %s821_s10, %s712_s5, %s712_s5, %s713_s7  }
  0x2e   : > { %p200_p12 = scmp.lt.s32.totalorder %s709_s17, 3  ;;  %p957_p1 = scmp.ge.s32.totalorder %s709_s17, 1 }
  0x30   : > { %p201_p3 = pnand %p957_p1, %p200_p12 }
  0x31   : > { %s853_s11 = sand.u32 (!%p201_p3), 1, %s693_s13  }
  0x32   : > { %204 = sbr.rel (%p201_p3) target bundleno = 439 (0x1b7), region = 32  ;;  %s511_s18 = sshll.u32 (!%p201_p3), %s853_s11, 4 }
  0x33   : > { %s207_s19 = scalar_lea.sflag (!%p201_p3), [#allocation4], %s853_s11  ;;  %s210_s21 = scalar_lea.vmem (!%p201_p3), [#allocation3], %s511_s18 }
  0x39   : > { %680 = dma.done.wait (%p788_p8), %s207_s19, 256  }
  0x3a   : > { %682 = vsyncadd (%p788_p8), %s207_s19, 4294967040  ;;  %vm262_vm0 = vcmask 130048   ;;  %v260_v0 = vld [vmem:[%s210_s21] sm:$0xff]  ;;  %v863_v1 = vld [vmem:[%s210_s21 + $0x8] sm:$0xff]  ;;  %s714_s6 = smov 16   ;;  %vm278_vm1 = vcmask 1047680   ;;  %v270_v12 = vlaneseq }
  0x3b   : > { %279 = vrot.lane.b32.xlu0 %v260_v0, %s714_s6  ;;  %263 = vst.msk [vmem:[#allocation2 + $0x1] sm:$0xff] %vm262_vm0, %v260_v0  ;;  %264 = vst.msk [vmem:[#allocation2 + $0x9] sm:$0xff] %vm262_vm0, %v863_v1  ;;  %p246_p8 = scmp.lt.s32.totalorder %s701_s15, 1  ;;  %vm266_vm2 = vcmask 122880   ;;  %s715_s29 = smov 127   ;;  %v717_v59 = vmov 0.0  }
  0x3c   : > { %s716_s30 = smov 113   ;;  %v271_v13 = vand.u32 127, %v270_v12  ;;  %v273_v14 = vshrl.u32 %v270_v12, 7  ;;  %s526_s4 = sshll.u32 %s701_s15, 8 }
  0x3d   : > { %s247_s24 = scalar_select %p246_p8, %s701_s15, 1 }
  0x3e   : > { %v339_v15 = vsub.s32 15, %v271_v13  ;;  %v274_v16 = vadd.s32 8, %v273_v14  ;;  %vm337_vm3 = vcmp.lt.s32.totalorder %v271_v13, 1  ;;  %vm344_vm5 = vcmp.lt.s32.totalorder %v273_v14, 1  ;;  %s244_s5 = scalar_lea.vmem [#allocation6], %s511_s18  ;;  %s377_s15 = scalar_lea.sflag [#allocation5], %s853_s11 }
  0x3f   : > { %282 = vrot.lane.b32.xlu0 %v863_v1, %s714_s6  ;;  %s251_s10 = scalar_lea.vmem %s948_s1, %s247_s24  ;;  %s257_s28 = scalar_lea.vmem %s949_s2, %s247_s24  ;;  %v338_v18 = vsel %vm337_vm3, %v271_v13, 1  ;;  %v345_v20 = vsel %vm344_vm5, %v273_v14, 1  ;;  %v291_v24 = vadd.s32 1, %v271_v13  ;;  %v513_v28 = vadd.s32 4294967295, %v271_v13 }
  0x40   : > { %v265_v6 = vld [vmem:[%s251_s10] sm:$0x1]  ;;  %vm340_vm4 = vcmp.lt.s32.totalorder %v339_v15, 1  ;;  %v349_v17 = vsub.s32 15, %v274_v16  ;;  %v354_v22 = vadd.s32 1, %v345_v20  ;;  %v514_v30 = vadd.s32 4294967295, %v273_v14 }
  0x41   : > { %267 = vst.msk [vmem:[#allocation2] sm:$0x1] %vm266_vm2, %v265_v6  ;;  %v268_v7 = vld [vmem:[%s257_s28] sm:$0x1]  ;;  %v341_v19 = vsel %vm340_vm4, %v339_v15, 1  ;;  %vm292_vm7 = vcmp.le.s32.totalorder %v291_v24, 15 }
  0x42   : > { %269 = vst.msk [vmem:[#allocation2 + $0x11] sm:$0x1] %vm266_vm2, %v268_v7  ;;  %vm352_vm6 = vcmp.lt.s32.totalorder %v349_v17, 1  ;;  %v342_v21 = vadd.s32 %v341_v19, %v338_v18  ;;  %v356_v26 = vadd.s32 1, %v354_v22  ;;  %vm306_vm8 = vcmp.ge.s32.totalorder %v513_v28, 0  ;;  %v317_v43 = vld [vmem:[#allocation2 + $0x2] sm:$0xff] }
  0x43   : > { %v353_v23 = vsel %vm352_vm6, %v349_v17, 1  ;;  %v320_v34 = vadd.s32 1, %v274_v16  ;;  %vm331_vm9 = vcmp.ge.s32.totalorder %v514_v30, 0  ;;  %v328_v56 = vld [vmem:[#allocation2 + $0x8] sm:$0xff]  ;;  %s392_s7 = sshll.u32 %s244_s5, 4  ;;  %p958_p11 = scmp.ne.s32.totalorder %s954_s25, 0  ;;  %s897_s7 = int_to_ptr.vmem [resolvable:$true] %s392_s7 }
  0x44   : > { %v343_v25 = vadd.s32 1, %v342_v21  ;;  %v355_v27 = vadd.s32 1, %v353_v23  ;;  %s627_s18 = scalar_lea.vmem %s897_s7, 256  ;;  %s718_s24 = smov [#allocation6]  }
  0x45   : > { %vm322_vm10 = vcmp.le.s32.totalorder %v320_v34, 15  ;;  %p628_p9 = scmp.ne.s32.totalorder %s897_s7, %s627_s18  ;;  %s631_s8 = sshll.u32 %s718_s24, 4  ;;  %s632_s8 = int_to_ptr.vmem [resolvable:$false] %s631_s8 }
  0x46   : > { %v358_v31 = vadd.s32 %v356_v26, %v343_v25  ;;  %v357_v32 = vadd.s32 1, %v355_v27  ;;  %s633_s9 = scalar_lea.vmem %s632_s8, 512  ;;  %p634_p13 = scmp.lt.s32.totalorder %s897_s7, %s632_s8 }
  0x47   : > { %p629_p0 = pnand %p628_p9, %p958_p11  ;;  %p635_p2 = scmp.lt.s32.totalorder %s633_s9, %s627_s18 }
  0x48   : > { %v516_v37 = vadd.s32 4294967295, %v358_v31  ;;  %v327_v39 = vld [vmem:[#allocation2] sm:$0xff]  ;;  %v359_v40 = vadd.s32 %v357_v32, %v343_v25 }
  0x49   : > { %v318_v45 = vld [vmem:[#allocation2 + $0xa] sm:$0xff]  ;;  %v333_v46 = vsel %vm331_vm9, %v327_v39, 0.0  ;;  %p630_p6 = pneg %p629_p0  ;;  %p636_p5 = por %p635_p2, %p634_p13 }
  0x4a   : > { %v362_v48 = vcvt.s32.f32 %v516_v37  ;;  %v517_v50 = vadd.s32 4294967295, %v359_v40  ;;  %v324_v52 = vsel %vm322_vm10, %v318_v45, 0.0 }
  0x4b   : > { %p637_p4 = pnand %p636_p5, %p630_p6 }
  0x4c   : > { %v363_v57 = vcvt.s32.f32 %v517_v50 }
  0xad   : > { %v280_v2 = vpop.permute.xlu0 %279 }
  0xae   : > { %v281_v3 = vsel %vm278_vm1, %v280_v2, %v260_v0 }
  0xaf   : > { %285 = vrot.lane.b32.xlu1 %v281_v3, %s714_s6 }
  0xb1   : > { %v283_v4 = vpop.permute.xlu0 %282 }
  0xb2   : > { %v284_v5 = vsel %vm278_vm1, %v283_v4, %v863_v1 }
  0xb3   : > { %287 = vrot.lane.b32.xlu1 %v284_v5, %s714_s6  ;;  %s895_s6 = scalar_lea.hbm %s950_s3, %s526_s4 }
 0x121   : > { %v286_v8 = vpop.permute.xlu1 %285 }
 0x122   : > { %v289_v9 = vsel %vm278_vm1, %v286_v8, %v260_v0 }
 0x123   : > { %295 = vrot.lane.b32.xlu0 %v289_v9, %s715_s29 }
 0x125   : > { %v288_v10 = vpop.permute.xlu1 %287 }
 0x126   : > { %v290_v11 = vsel %vm278_vm1, %v288_v10, %v863_v1 }
 0x127   : > { %307 = vrot.lane.b32.xlu0 %v289_v9, %s716_s30  ;;  %297 = vrot.lane.b32.xlu1 %v290_v11, %s715_s29 }
 0x12b   : > { %309 = vrot.lane.b32.xlu1 %v290_v11, %s716_s30 }
 0x195   : > { %v296_v29 = vpop.permute.xlu0 %295 }
 0x196   : > { %v301_v33 = vsel %vm292_vm7, %v296_v29, 0.0 }
 0x197   : > { %v303_v35 = vadd.f32 %v301_v33, %v260_v0 }
 0x199   : > { %v298_v36 = vpop.permute.xlu1 %297  ;;  %v308_v38 = vpop.permute.xlu0 %307 }
 0x19a   : > { %v302_v41 = vsel %vm292_vm7, %v298_v36, 0.0  ;;  %v313_v42 = vsel %vm306_vm8, %v308_v38, 0.0 }
 0x19b   : > { %v315_v44 = vadd.f32 %v313_v42, %v303_v35  ;;  %v304_v47 = vadd.f32 %v302_v41, %v863_v1 }
 0x19d   : > { %v325_v49 = vadd.f32 %v317_v43, %v315_v44  ;;  %v310_v51 = vpop.permute.xlu1 %309 }
 0x19e   : > { %v314_v53 = vsel %vm306_vm8, %v310_v51, 0.0 }
 0x19f   : > { %v335_v54 = vadd.f32 %v333_v46, %v325_v49  ;;  %v316_v55 = vadd.f32 %v314_v53, %v304_v47 }
 0x1a1   : > { %vm364_vm11 = vcmp.gt.f32.partialorder %v335_v54, 0.0  ;;  %vm366_vm12 = vcmp.lt.f32.partialorder %v335_v54, %v362_v48  ;;  %v326_v58 = vadd.f32 %v324_v52, %v316_v55 }
 0x1a2   : > { %vm368_vm13 = vmand %vm364_vm11, %vm366_vm12 }
 0x1a3   : > { %v518_v60 = vsel %vm368_vm13, 1.0, %v717_v59  ;;  %v336_v61 = vadd.f32 %v328_v56, %v326_v58 }
 0x1a4   : > { %374 = vst.msk [vmem:[%s244_s5] sm:$0xff] %vm262_vm0, %v518_v60 }
 0x1a5   : > { %vm365_vm14 = vcmp.gt.f32.partialorder %v336_v61, 0.0  ;;  %vm367_vm15 = vcmp.lt.f32.partialorder %v336_v61, %v363_v57 }
 0x1a6   : > { %vm369_vm1 = vmand %vm365_vm14, %vm367_vm15 }
 0x1a7   : > { %v519_v62 = vsel %vm369_vm1, 1.0, %v717_v59 }
 0x1a8   : > { %375 = vst.msk [vmem:[%s244_s5 + $0x8] sm:$0xff] %vm262_vm0, %v519_v62 }
 0x1a9   : > { %640 = shalt.err (!%p637_p4)
}
 0x1aa   : > { %s641_s10 = scalar_lea.hbm %s895_s6, 256  ;;  %s645_s28 = scalar_lea.hbm %s950_s3, 512 }
 0x1ab   : > { %p642_p7 = scmp.ne.s32.totalorder %s895_s6, %s641_s10  ;;  %p646_p1 = scmp.lt.u32.totalorder %s895_s6, %s950_s3 }
 0x1ac   : > { %p647_p3 = scmp.lt.u32.totalorder %s645_s28, %s641_s10  ;;  %p649_p9 = scmp.lt.u32.totalorder %s641_s10, %s895_s6 }
 0x1ad   : > { %p643_p10 = pnand %p642_p7, %p958_p11 }
 0x1ae   : > { %p648_p8 = por %p647_p3, %p646_p1 }
 0x1af   : > { %p644_p12 = pneg %p643_p10 }
 0x1b0   : > { %p650_p0 = por %p649_p9, %p648_p8 }
 0x1b2   : > { %p651_p6 = pnand %p650_p0, %p644_p12 }
 0x1b4   : > { %654 = shalt.err (!%p651_p6)
}
 0x1b5   : > { %s719_s4 = smov 128   ;;  %s720_s5 = smov 8  }
 0x1b6   : > { %529 = dma.vmem_to_hbm [thread:$0]  (%p958_p11), %s897_s7, 256, %s895_s6, %s377_s15, %s719_s4, %s719_s4, %s720_s5  }
 0x1b7 PF: > { %s407_s19 = sand.u32 1, %s689_s12   ;;  %p959_p13 = scmp.ne.s32.totalorder %s955_s27, 0 }
 0x1b8   : > { %p960_p2 = scmp.ge.s32.totalorder %s709_s17, 2  ;;  %s408_s21 = scalar_lea.sflag [#allocation5], %s407_s19 }
 0x1ba   : > { %p536_p5 = pnand %p960_p2, %p959_p13 }
 0x1bc   : > { %684 = dma.done.wait (!%p536_p5), %s408_s21, 256  }
 0x1bd   : > { %686 = vsyncadd (!%p536_p5), %s408_s21, 4294967040  ;;  %s19_s17 = sadd.s32 1, %s709_s17   ;;  %s961_s12 = smov %s693_s13 }
 0x1be   : > { %p16_p4 = scmp.ge.s32.totalorder %s19_s17, 4   ;;  %s962_s13 = smov %s697_s14 }
 0x1bf   : > { %s963_s14 = smov %s797_s26  ;;  %s964_s15 = smov %s705_s16 }
 0x1c0   : > { %s965_s16 = smov %s967_s20  ;;  %18 = sbr.rel (!%p16_p4) target bundleno = 6 (0x6), region = 83 }
 0x1c7   :  { %413 = vsyncpa [#allocation4], 1 }
 0x1c8   :  { %415 = vsyncpa [#allocation4 + $0x1], 1 }
 0x1c9   :  { %416 = vsyncpa [#allocation5], 1 }
 0x1ca   :  { %418 = vsyncpa [#allocation5 + $0x1], 1 }

</bundles_post_ra>
